<compile_context>
chip_gen: v5e
topology: v5e:2x2
jax: 0.10.0
libtpu: 0.0.40
codegen_flags: <defaults>
</compile_context>

<pallas_src>
import jax
import jax.numpy as jnp
from jax.experimental import pallas as pl
from jax.experimental.pallas import tpu as pltpu


# ----------------------------------------------------------------------------
# Layout / tiling configuration
# ----------------------------------------------------------------------------
_LANE = 128                                  # lane-dense trailing dim
_VMEM_WORKSET_BYTES = 16 * 1024 * 1024       # double-buffered per-step budget
_MIN_GRID_STEPS = 4                          # keep >=2 steps for v7x's 2 TCs

_SMEM_SPEC = pl.BlockSpec(memory_space=pltpu.MemorySpace.SMEM)
_COMPILER_PARAMS = pltpu.CompilerParams(
    dimension_semantics=("parallel",),
    vmem_limit_bytes=64 * 1024 * 1024,
)


def _round_up(x, m):
    return (x + m - 1) // m * m


def _choose_row_tile(rows, n_streams):
    """Row tile (multiple of 8) sized against the VMEM budget, with enough
    grid steps for megacore / v7x 2-TC sharding."""
    bytes_per_row = 2 * n_streams * _LANE * 4          # double-buffered f32
    cap = max(8, (_VMEM_WORKSET_BYTES // bytes_per_row) // 8 * 8)
    target = _round_up(max(1, -(-rows // _MIN_GRID_STEPS)), 8)
    tr = min(cap, target)
    if tr >= rows:
        return rows          # single block covering the whole (small) array
    return tr


def _vec_spec(tr):
    # (rows, LANE) arrays
    return pl.BlockSpec((tr, _LANE), lambda i: (i, 0))


def _dim_spec(nd, tr):
    # (ndim, rows, LANE) arrays: ndim is a leading, untiled axis
    return pl.BlockSpec((nd, tr, _LANE), lambda i: (0, i, 0))


# ----------------------------------------------------------------------------
# Pallas kernels
#   r block   : (TR, LANE)
#   dr block  : (ND, TR, LANE)   -- each [d] slice is a dense (TR, LANE) tile
# ----------------------------------------------------------------------------
def _jastrow_fwd_kernel(params_ref, r_ref, k_ref):
    """K = w0 * r / (1 + w * r)."""
    w0 = params_ref[0]
    w = params_ref[1]
    r = r_ref[...]
    inv = pl.reciprocal(1.0 + w * r, approx=False)
    k_ref[...] = (w0 * r) * inv


def _jastrow_deriv_kernel(params_ref, r_ref, dr_ref, der_ref):
    """der[d] = dK/dr * dr[d]."""
    w0 = params_ref[0]
    w = params_ref[1]
    inv = pl.reciprocal(1.0 + w * r_ref[...], approx=False)
    dk = (w0 * inv) * inv
    for d in range(dr_ref.shape[0]):          # static unroll, reuse dk vregs
        der_ref[d] = dk * dr_ref[d]


def _jastrow_second_deriv_kernel(params_ref, r_ref, dr_ref, d2r_ref, der2_ref):
    """der2[d] = d2K/dr2 * dr[d]^2 + dK/dr * d2r[d]."""
    w0 = params_ref[0]
    w = params_ref[1]
    inv = pl.reciprocal(1.0 + w * r_ref[...], approx=False)
    dk = (w0 * inv) * inv
    d2k = (-2.0 * w) * dk * inv
    for d in range(dr_ref.shape[0]):
        drd = dr_ref[d]
        der2_ref[d] = d2k * (drd * drd) + dk * d2r_ref[d]


def _jastrow_all_kernel(params_ref, r_ref, dr_ref, d2r_ref,
                        k_ref, der_ref, der2_ref):
    """Fused: K, first derivative and second derivative in one pass."""
    w0 = params_ref[0]
    w = params_ref[1]
    r = r_ref[...]
    inv = pl.reciprocal(1.0 + w * r, approx=False)
    k_ref[...] = (w0 * r) * inv
    dk = (w0 * inv) * inv
    d2k = (-2.0 * w) * dk * inv
    for d in range(dr_ref.shape[0]):
        drd = dr_ref[d]
        der_ref[d] = dk * drd
        der2_ref[d] = d2k * (drd * drd) + dk * d2r_ref[d]


# ----------------------------------------------------------------------------
# Wrapper
# ----------------------------------------------------------------------------
class JastrowKernelElectronNucleiPallas:
    """JAX/Pallas port of JastrowKernelElectronNucleiBase (Pade kernel)."""

    def __init__(self, nup, ndown, atomic_pos, w0=1.0, w=1.0):
        self.nup, self.ndown = nup, ndown
        self.nelec = nup + ndown
        self.atoms = atomic_pos
        self.natoms = atomic_pos.shape[0]
        self.ndim = 3
        # deterministic variational parameters (synthetic init)
        self.params = jnp.array([w0, w], dtype=jnp.float32)

    # ---- flat lane-dense layout plumbing ----------------------------------
    @staticmethod
    def _flat_geom(total):
        total_pad = _round_up(total, _LANE)
        return total_pad, total_pad // _LANE

    def _flat_r(self, r):
        b, ne, na = r.shape
        total = b * ne * na
        total_pad, rows = self._flat_geom(total)
        if total_pad == total:
            return r.reshape(rows, _LANE), total, rows
        rf = jnp.pad(r.reshape(-1), (0, total_pad - total))
        return rf.reshape(rows, _LANE), total, rows

    def _flat_d(self, d):
        # (B, nd, Ne, Na) -> (nd, rows, LANE), element order aligned with r
        b, nd, ne, na = d.shape
        total = b * ne * na
        total_pad, rows = self._flat_geom(total)
        df = jnp.moveaxis(d, 1, 0).reshape(nd, total)
        if total_pad != total:
            df = jnp.pad(df, ((0, 0), (0, total_pad - total)))
        return df.reshape(nd, rows, _LANE)

    @staticmethod
    def _unflat_vec(out, shape):
        b, ne, na = shape
        total = b * ne * na
        if out.size != total:
            out = out.reshape(-1)[:total]
        return out.reshape(b, ne, na)

    @staticmethod
    def _unflat_dim(out, shape):
        b, nd, ne, na = shape
        total = b * ne * na
        o = out.reshape(nd, -1)
        if o.shape[1] != total:
            o = o[:, :total]
        return jnp.moveaxis(o.reshape(nd, b, ne, na), 0, 1)

    # ---- forward : (B, Ne, Na) -> (B, Ne, Na) ------------------------------
    def forward(self, r):
        rp, _, rows = self._flat_r(r)
        tr = _choose_row_tile(rows, 2)
        out = pl.pallas_call(
            _jastrow_fwd_kernel,
            out_shape=jax.ShapeDtypeStruct((rows, _LANE), r.dtype),
            grid=(pl.cdiv(rows, tr),),
            in_specs=[_SMEM_SPEC, _vec_spec(tr)],
            out_specs=_vec_spec(tr),
            compiler_params=_COMPILER_PARAMS,
        )(self.params, rp)
        return self._unflat_vec(out, r.shape)

    # ---- compute_derivative : -> (B, 3, Ne, Na) ----------------------------
    def compute_derivative(self, r, dr):
        rp, _, rows = self._flat_r(r)
        drp = self._flat_d(dr)
        nd = dr.shape[1]
        tr = _choose_row_tile(rows, 1 + 2 * nd)
        out = pl.pallas_call(
            _jastrow_deriv_kernel,
            out_shape=jax.ShapeDtypeStruct((nd, rows, _LANE), r.dtype),
            grid=(pl.cdiv(rows, tr),),
            in_specs=[_SMEM_SPEC, _vec_spec(tr), _dim_spec(nd, tr)],
            out_specs=_dim_spec(nd, tr),
            compiler_params=_COMPILER_PARAMS,
        )(self.params, rp, drp)
        return self._unflat_dim(out, dr.shape)

    # ---- compute_second_derivative : -> (B, 3, Ne, Na) ---------------------
    def compute_second_derivative(self, r, dr, d2r):
        rp, _, rows = self._flat_r(r)
        drp = self._flat_d(dr)
        d2rp = self._flat_d(d2r)
        nd = dr.shape[1]
        tr = _choose_row_tile(rows, 1 + 3 * nd)
        out = pl.pallas_call(
            _jastrow_second_deriv_kernel,
            out_shape=jax.ShapeDtypeStruct((nd, rows, _LANE), r.dtype),
            grid=(pl.cdiv(rows, tr),),
            in_specs=[_SMEM_SPEC, _vec_spec(tr),
                      _dim_spec(nd, tr), _dim_spec(nd, tr)],
            out_specs=_dim_spec(nd, tr),
            compiler_params=_COMPILER_PARAMS,
        )(self.params, rp, drp, d2rp)
        return self._unflat_dim(out, dr.shape)

    # ---- fused: K + both derivatives from one pass (preferred) -------------
    def compute_all(self, r, dr, d2r):
        rp, _, rows = self._flat_r(r)
        drp = self._flat_d(dr)
        d2rp = self._flat_d(d2r)
        nd = dr.shape[1]
        tr = _choose_row_tile(rows, 2 + 4 * nd)
        k, der, der2 = pl.pallas_call(
            _jastrow_all_kernel,
            out_shape=(jax.ShapeDtypeStruct((rows, _LANE), r.dtype),
                       jax.ShapeDtypeStruct((nd, rows, _LANE), r.dtype),
                       jax.ShapeDtypeStruct((nd, rows, _LANE), r.dtype)),
            grid=(pl.cdiv(rows, tr),),
            in_specs=[_SMEM_SPEC, _vec_spec(tr),
                      _dim_spec(nd, tr), _dim_spec(nd, tr)],
            out_specs=(_vec_spec(tr), _dim_spec(nd, tr), _dim_spec(nd, tr)),
            compiler_params=_COMPILER_PARAMS,
        )(self.params, rp, drp, d2rp)
        return (self._unflat_vec(k, r.shape),
                self._unflat_dim(der, dr.shape),
                self._unflat_dim(der2, dr.shape))


# ----------------------------------------------------------------------------
# Reference (plain JAX) for verification
# ----------------------------------------------------------------------------
def _ref_forward(r, w0, w):
    return w0 * r / (1.0 + w * r)


def _ref_derivative(r, dr, w0, w):
    dk = w0 / (1.0 + w * r) ** 2
    return dk[:, None] * dr


def _ref_second_derivative(r, dr, d2r, w0, w):
    inv = 1.0 / (1.0 + w * r)
    dk = w0 * inv ** 2
    d2k = -2.0 * w0 * w * inv ** 3
    return d2k[:, None] * dr * dr + dk[:, None] * d2r


# ----------------------------------------------------------------------------
if __name__ == "__main__":
    key = jax.random.PRNGKey(0)
    k1, k2, k3, k4 = jax.random.split(key, 4)

    nup, ndown = 4, 4
    nelec = nup + ndown          # 8
    natoms = 4
    nbatch = 16
    ndim = 3
    # nbatch * nelec * natoms = 512 -> lane-divisible, zero padding anywhere

    atomic_pos = jax.random.normal(k1, (natoms, ndim), dtype=jnp.float32)
    # electron-nucleus distances are positive
    r = jax.random.uniform(k2, (nbatch, nelec, natoms),
                           dtype=jnp.float32, minval=0.1, maxval=3.0)
    dr = jax.random.normal(k3, (nbatch, ndim, nelec, natoms), dtype=jnp.float32)
    d2r = jax.random.normal(k4, (nbatch, ndim, nelec, natoms), dtype=jnp.float32)

    w0, w = 1.0, 1.0
    jastrow = JastrowKernelElectronNucleiPallas(nup, ndown, atomic_pos,
                                                w0=w0, w=w)

    out_fwd = jax.block_until_ready(jastrow.forward(r))
    out_der = jax.block_until_ready(jastrow.compute_derivative(r, dr))
    out_der2 = jax.block_until_ready(
        jastrow.compute_second_derivative(r, dr, d2r))
    k_all, der_all, der2_all = jax.block_until_ready(
        jastrow.compute_all(r, dr, d2r))

    ref_fwd = _ref_forward(r, w0, w)
    ref_der = _ref_derivative(r, dr, w0, w)
    ref_der2 = _ref_second_derivative(r, dr, d2r, w0, w)

    assert out_fwd.shape == (nbatch, nelec, natoms)
    assert out_der.shape == (nbatch, ndim, nelec, natoms)
    assert out_der2.shape == (nbatch, ndim, nelec, natoms)
    assert k_all.shape == (nbatch, nelec, natoms)
    assert der_all.shape == (nbatch, ndim, nelec, natoms)
    assert der2_all.shape == (nbatch, ndim, nelec, natoms)
    assert jnp.allclose(out_fwd, ref_fwd, atol=1e-5, rtol=1e-5)
    assert jnp.allclose(out_der, ref_der, atol=1e-5, rtol=1e-5)
    assert jnp.allclose(out_der2, ref_der2, atol=1e-5, rtol=1e-5)
    assert jnp.allclose(k_all, ref_fwd, atol=1e-5, rtol=1e-5)
    assert jnp.allclose(der_all, ref_der, atol=1e-5, rtol=1e-5)
    assert jnp.allclose(der2_all, ref_der2, atol=1e-5, rtol=1e-5)

    print("KERNEL_OK")
</pallas_src>

<mosaic_0001>
module attributes {stable_mosaic.version = 11 : i64} {
  func.func @_jastrow_fwd_kernel(%arg0: i32, %arg1: memref<2xf32, #tpu.memory_space<smem>>, %arg2: memref<4x128xf32, #tpu.memory_space<vmem>>, %arg3: memref<4x128xf32, #tpu.memory_space<vmem>>) attributes {dimension_semantics = [#tpu.dimension_semantics<parallel>], iteration_bounds = array<i64: 1>, scalar_prefetch = 0 : i64, scratch_operands = 0 : i64, tpu.core_type = #tpu.core_type<tc>, window_params = [{transform_indices = @transform_0, window_bounds = array<i64: 2>}, {transform_indices = @transform_1, window_bounds = array<i64: 4, 128>}, {transform_indices = @transform_2, window_bounds = array<i64: 4, 128>}]} {
    %c0 = arith.constant 0 : index
    %0 = memref.load %arg1[%c0] : memref<2xf32, #tpu.memory_space<smem>>
    %c1 = arith.constant 1 : index
    %1 = memref.load %arg1[%c1] : memref<2xf32, #tpu.memory_space<smem>>
    %c0_0 = arith.constant 0 : index
    %c0_1 = arith.constant 0 : index
    %2 = vector.load %arg2[%c0_0, %c0_1] : memref<4x128xf32, #tpu.memory_space<vmem>>, vector<4x128xf32>
    %3 = vector.broadcast %1 : f32 to vector<4x128xf32>
    %4 = arith.mulf %3, %2 : vector<4x128xf32>
    %cst = arith.constant 1.000000e+00 : f32
    %5 = vector.broadcast %cst : f32 to vector<4x128xf32>
    %6 = arith.addf %5, %4 : vector<4x128xf32>
    %7 = tpu.reciprocal %6 : vector<4x128xf32> -> vector<4x128xf32>
    %8 = vector.broadcast %0 : f32 to vector<4x128xf32>
    %9 = arith.mulf %8, %2 : vector<4x128xf32>
    %10 = arith.mulf %9, %7 : vector<4x128xf32>
    %c0_2 = arith.constant 0 : index
    %c0_3 = arith.constant 0 : index
    %11 = vector.load %arg3[%c0_2, %c0_3] : memref<4x128xf32, #tpu.memory_space<vmem>>, vector<4x128xf32>
    tpu.vector_store %arg3[%c0_2, %c0_3], %10 {strides = array<i32>} : memref<4x128xf32, #tpu.memory_space<vmem>>, vector<4x128xf32>,
    return
  }
  func.func @transform_0(%arg0: i32) -> i32 {
    %c0_i32 = arith.constant 0 : i32
    %c0_i32_0 = arith.constant 0 : i32
    return %c0_i32 : i32
  }
  func.func @transform_1(%arg0: i32) -> (i32, i32) {
    %c0_i32 = arith.constant 0 : i32
    %c0_i32_0 = arith.constant 0 : i32
    return %arg0, %c0_i32 : i32, i32
  }
  func.func @transform_2(%arg0: i32) -> (i32, i32) {
    %c0_i32 = arith.constant 0 : i32
    %c0_i32_0 = arith.constant 0 : i32
    return %arg0, %c0_i32 : i32, i32
  }
}

</mosaic_0001>

<bundles_post_ra>
// kernel: tpu_custom_call.1
= control target key start
LH: loop header
LB: loop body
LE: loop exit
PB: predicated region body
PF: predicated region fallthrough
CT: control target
= control target key end

     0   :  { %7 = vsyncpa [#allocation5], 0  ;;  %s180_s0 = inlined_call_operand.hbm [shape: f32[2], index: 0, kind: input, shape index: {}]   ;;  %s181_s1 = inlined_call_operand.hbm [shape: f32[4,128], index: 1, kind: input, shape index: {}]   ;;  %s182_s2 = inlined_call_operand.hbm [shape: f32[4,128], index: 2, kind: output, shape index: {}]  }
   0x1   :  { %8 = vsyncpa [#allocation3], 0 }
   0x2   :  { %9 = vsyncpa [#allocation4], 0  ;;  %s15_s11 = sshll.u32 %s180_s0, 4  ;;  %s24_s14 = sshll.u32 %s181_s1, 4  ;;  %s16_s11 = int_to_ptr.hbm [resolvable:$true] %s15_s11  ;;  %s25_s14 = int_to_ptr.hbm [resolvable:$true] %s24_s14 }
   0x3   :  { %s153_s15 = smov [#allocation2]   ;;  %s154_s16 = smov [#allocation6]  }
   0x4   :  { %18 = dma.hbm_to_smem %s16_s11, 16, %s153_s15, [#allocation5]  }
   0x5   :  { %s26_s17 = sshll.u32 %s154_s16, 4  ;;  %s27_s17 = int_to_ptr.vmem [resolvable:$true] %s26_s17 }
   0x6   :  { %29 = dma.hbm_to_vmem [thread:$0]  %s25_s14, 64, %s27_s17, [#allocation3]  }
   0x7   :  { %147 = dma.done.wait [#allocation5], 16  }
   0x8   :  { %148 = vsyncadd [#allocation5], 4294967280 }
   0x9   :  { %149 = dma.done.wait [#allocation3], 64  }
   0xa   :  { %150 = vsyncadd [#allocation3], 4294967232 }
   0xb   :  { %38 = sfence }
   0xc   :  { %s81_s18 = sld [smem:[#allocation2 + $0x1]]  ;;  %v41_v0 = vld [vmem:[#allocation6] sm:$0xf]  ;;  %s155_s1 = smov [#allocation7]  }
   0xd   :  { %s39_s0 = sld [smem:[#allocation2]]  ;;  %s68_s19 = sshll.u32 %s155_s1, 4  ;;  %s69_s19 = int_to_ptr.vmem [resolvable:$true] %s68_s19 }
   0xe   :  { %s70_s22 = sshll.u32 %s182_s2, 4  ;;  %s71_s22 = int_to_ptr.hbm [resolvable:$true] %s70_s22 }
  0x12   :  { %v42_v1 = vstv %s81_s18 }
  0x13   :  { %v43_v2 = vmul.f32 %v42_v1, %v41_v0  ;;  %v59_v9 = vstv %s39_s0 }
  0x14   :  { %v60_v13 = vmul.f32 %v59_v9, %v41_v0 }
  0x15   :  { %v44_v3 = vadd.f32 1.0, %v43_v2 }
  0x17   :  { %85 = vrcp.f32 %v44_v3  ;;  %v56_v6 = vand.u32 2147483648, %v44_v3  ;;  %vm50_vm0 = vweird.f32 %v44_v3  ;;  %v54_v8 = vand.u32 2147483647, %v44_v3 }
  0x19   :  { %v57_v11 = vor.u32 1.1754944e-38, %v56_v6  ;;  %vm55_vm3 = vcmp.eq.f32.partialorder %v54_v8, 8.507059e+37 }
  0x1d   :  { %v86_v4 = vpop.eup %85 }
  0x1e   :  { %v46_v5 = vmul.f32 %v86_v4, %v44_v3  ;;  %vm51_vm1 = vweird.f32 %v86_v4 }
  0x1f   :  { %vm52_vm2 = vmor %vm50_vm0, %vm51_vm1 }
  0x20   :  { %v47_v7 = vsub.f32 1.0, %v46_v5 }
  0x22   :  { %v48_v10 = vmul.f32 %v86_v4, %v47_v7 }
  0x24   :  { %v49_v12 = vadd.f32 %v86_v4, %v48_v10 }
  0x26   :  { %v53_v14 = vsel %vm52_vm2, %v86_v4, %v49_v12 }
  0x27   :  { %v58_v15 = vsel %vm55_vm3, %v57_v11, %v53_v14 }
  0x28   :  { %v61_v16 = vmul.f32 %v60_v13, %v58_v15 }
  0x2a   :  { %62 = vst [vmem:[#allocation7] sm:$0xf] %v61_v16 }
  0x2b   :  { %73 = dma.vmem_to_hbm [thread:$0]  %s69_s19, 64, %s71_s22, [#allocation4]  }
  0x2c   :  { %151 = dma.done.wait [#allocation4], 64  }
  0x2d   :  { %152 = vsyncadd [#allocation4], 4294967232 }
  0x2e   :  { %78 = vsyncpa [#allocation3], 1 }
  0x2f   :  { %79 = vsyncpa [#allocation4], 1 }
  0x30   :  { %80 = vsyncpa [#allocation5], 1 }

</bundles_post_ra>
